<compile_context>
chip_gen: v7x
topology: tpu7x:2x2x1
jax: 0.10.0
libtpu: 0.0.40
codegen_flags: <defaults>
</compile_context>

<pallas_src>
import functools

import jax
import jax.numpy as jnp
from jax.experimental import pallas as pl
from jax.experimental.pallas import tpu as pltpu


# ---------------------------------------------------------------------------
# Phase 1: global average pool (squeeze)
# ---------------------------------------------------------------------------
def _pool_kernel(x_ref, pooled_ref, acc_ref, *, inv_hw, tile_hw, tail):
    """Grid = (B, C_blocks, HW_tiles); HW is the last ("arbitrary") axis.

    x_ref      : [1, tile_c, tile_hw]  one batch row / channel block / spatial tile
    pooled_ref : [1, 1, tile_c]        per-(b, c-block) mean over H*W
    acc_ref    : [1, tile_c] f32       running channel sums (VMEM scratch)
    """
    hw_idx = pl.program_id(2)
    last_hw = pl.num_programs(2) - 1

    # ---- init accumulator on the first spatial tile of this (b, c) block ----
    @pl.when(hw_idx == 0)
    def _():
        acc_ref[...] = jnp.zeros_like(acc_ref)

    def _accumulate(mask_tail):
        x = x_ref[...].astype(jnp.float32)                    # [1, tile_c, tile_hw]
        if mask_tail:
            # `tail` is a static Python constant (length of the ragged tile).
            col = jax.lax.broadcasted_iota(jnp.int32, x.shape, 2)
            x = jnp.where(col < tail, x, 0.0)
        acc_ref[...] += jnp.sum(x, axis=-1)                   # [1, tile_c]

    if tail == tile_hw:
        # Evenly divisible spatial extent: no masking anywhere.
        _accumulate(False)
    else:
        # Masking only on the single ragged tail tile (review item: mask gating).
        @pl.when(hw_idx != last_hw)
        def _():
            _accumulate(False)

        @pl.when(hw_idx == last_hw)
        def _():
            _accumulate(True)

    # ---- finalize on the last spatial tile: write the mean ----
    @pl.when(hw_idx == last_hw)
    def _():
        pooled_ref[...] = (acc_ref[...] * inv_hw).reshape(pooled_ref.shape)


# ---------------------------------------------------------------------------
# Phase 2: batched excitation epilogue (1x1 convs + ReLU + sigmoid), M = B
# ---------------------------------------------------------------------------
def _epilogue_kernel(pooled_ref, w1_ref, b1_ref, w2_ref, b2_ref, gate_ref):
    # pooled: [B, C] f32; w1: [C, Cr]; b1: [1, Cr]; w2: [Cr, C]; b2: [1, C]
    h = jnp.dot(pooled_ref[...], w1_ref[...],
                preferred_element_type=jnp.float32) + b1_ref[...]   # [B, Cr]
    h = jnp.maximum(h, 0.0)
    o = jnp.dot(h, w2_ref[...],
                preferred_element_type=jnp.float32) + b2_ref[...]   # [B, C]
    gate_ref[...] = jax.nn.sigmoid(o).astype(gate_ref.dtype)


# ---------------------------------------------------------------------------
# Tiling helpers
# ---------------------------------------------------------------------------
def _vmem_budget():
    """(target x-block bytes, scoped-VMEM cap) tuned per TPU generation."""
    try:
        phys = pltpu.get_tpu_info().vmem_capacity_bytes
    except Exception:                      # be conservative if the query fails
        phys = 64 << 20
    if phys >= (100 << 20):                # v5e / v6e: 128 MiB physical VMEM
        return 8 << 20, 64 << 20
    return 4 << 20, 36 << 20               # v7x: 64 MiB physical VMEM


def _round128(t):
    return max((t // 128) * 128, 128)


def _pick_tiles(C, HW, itemsize, target_bytes):
    """Choose (tile_c, tile_hw) for the [1, tile_c, tile_hw] x block.

    Lane rules: tile_hw is a multiple of 128 or equals HW; tile_c equals C or
    is a multiple of 128 (also keeps the pooled-output block lane-legal).
    Preference: keep per-channel DMA segments long — tile over C rather than
    shrinking tile_hw below ~2048 lanes when C is large.
    """
    if C * HW * itemsize <= target_bytes:
        return C, HW                                  # whole image per block

    if C >= 256 and HW * 128 * itemsize <= 2 * target_bytes:
        tile_c = _round128(target_bytes // (HW * itemsize))
        return int(min(tile_c, C)), HW                # full-row DMA segments

    tile_hw = _round128(target_bytes // (C * itemsize))
    tile_hw = max(tile_hw, min(2048, _round128(HW)))  # keep segments long
    tile_hw = min(tile_hw, HW)
    if tile_hw != HW:
        tile_hw = _round128(tile_hw)
    return C, int(tile_hw)


def _fit_to_vmem(tile_c, tile_hw, itemsize, vmem_cap):
    """Shrink tiles until double-buffered x blocks (+ slack) fit the VMEM cap.
    Prefer shrinking tile_c (keeps per-channel DMA segments long)."""
    slack = 4 << 20
    while 2 * tile_c * tile_hw * itemsize + slack > vmem_cap:
        if tile_c > 128:
            tile_c = _round128(tile_c // 2)
        elif tile_hw > 128:
            tile_hw = _round128(tile_hw // 2)
        else:
            break
    return tile_c, tile_hw


# ---------------------------------------------------------------------------
# Forward wrapper
# ---------------------------------------------------------------------------
def se_forward(x_nchw, w1, b1, w2, b2, *, tile_hw=None, tile_c=None):
    """x_nchw: [B, C, H, W] (any float dtype; fed to the kernel natively).
       Conv weights in PyTorch layout: w1: [Cr, C, 1, 1], b1: [Cr],
       w2: [C, Cr, 1, 1], b2: [C].  Returns the sigmoid gate [B, C, 1, 1] f32."""
    B, C, H, W = x_nchw.shape
    Cr = w1.shape[0]
    HW = H * W
    itemsize = jnp.dtype(x_nchw.dtype).itemsize

    # Free reshape only — no transpose, no dtype upcast before the call.
    x_k = x_nchw.reshape(B, C, HW)
    w1_k = jnp.transpose(w1.reshape(Cr, C)).astype(jnp.float32)   # [C, Cr] (tiny)
    b1_k = b1.reshape(1, Cr).astype(jnp.float32)
    w2_k = jnp.transpose(w2.reshape(C, Cr)).astype(jnp.float32)   # [Cr, C] (tiny)
    b2_k = b2.reshape(1, C).astype(jnp.float32)

    target_block, vmem_cap = _vmem_budget()

    # ---- tile selection + validation of user overrides ----
    auto_c, auto_hw = _pick_tiles(C, HW, itemsize, target_block)
    th = auto_hw if tile_hw is None else int(tile_hw)
    tc = auto_c if tile_c is None else int(tile_c)
    th = min(th, HW)
    if th != HW:                       # round to a legal (multiple-of-128) tile
        th = _round128(th)
        if th >= HW:
            th = HW
    tc = min(tc, C)
    if tc != C:
        tc = _round128(tc)
        if tc >= C:
            tc = C
    tc, th = _fit_to_vmem(tc, th, itemsize, vmem_cap)

    num_c = pl.cdiv(C, tc)
    num_hw = pl.cdiv(HW, th)
    tail = HW - (num_hw - 1) * th      # static length of the last spatial tile

    # ---- phase 1: pooled sums -> means, grid (B, C_blocks, HW_tiles) ----
    pool_kernel = functools.partial(_pool_kernel, inv_hw=1.0 / HW,
                                    tile_hw=th, tail=tail)

    block_bytes = tc * th * itemsize
    vmem_limit = int(min(max(2 * block_bytes + (4 << 20), 16 << 20), vmem_cap))

    pool_cost = pl.CostEstimate(
        flops=int(B * C * HW), transcendentals=0,
        bytes_accessed=int(x_k.size * itemsize + B * C * 4))

    pooled = pl.pallas_call(
        pool_kernel,
        out_shape=jax.ShapeDtypeStruct((B, 1, C), jnp.float32),
        grid_spec=pltpu.PrefetchScalarGridSpec(
            num_scalar_prefetch=0,
            grid=(B, num_c, num_hw),   # reduction axis last ("arbitrary")
            in_specs=[
                # x streamed; default double-buffering (pl.Buffered(3) is a
                # possible sweep for DMA-issue jitter, left at default).
                pl.BlockSpec((1, tc, th), lambda b, c, h: (b, c, h)),
            ],
            out_specs=pl.BlockSpec((1, 1, tc), lambda b, c, h: (b, 0, c)),
            scratch_shapes=[pltpu.VMEM((1, tc), jnp.float32)],
        ),
        compiler_params=pltpu.CompilerParams(
            dimension_semantics=("parallel", "parallel", "arbitrary"),
            vmem_limit_bytes=vmem_limit),
        cost_estimate=pool_cost,
    )(x_k)

    # ---- phase 2: batched (M = B) 1x1 convs + ReLU + sigmoid ----
    pooled2d = pooled.reshape(B, C)    # tiny (B*C*4 bytes) wrapper-side reshape

    epi_cost = pl.CostEstimate(
        flops=int(4 * B * C * Cr + 2 * B * (C + Cr)),
        transcendentals=int(B * C),
        bytes_accessed=int((2 * B * C + 2 * C * Cr + C + Cr) * 4))

    gate = pl.pallas_call(
        _epilogue_kernel,
        out_shape=jax.ShapeDtypeStruct((B, C), jnp.float32),
        grid=(1,),
        in_specs=[
            pl.BlockSpec((B, C), lambda i: (0, 0)),
            pl.BlockSpec((C, Cr), lambda i: (0, 0)),
            pl.BlockSpec((1, Cr), lambda i: (0, 0)),
            pl.BlockSpec((Cr, C), lambda i: (0, 0)),
            pl.BlockSpec((1, C), lambda i: (0, 0)),
        ],
        out_specs=pl.BlockSpec((B, C), lambda i: (0, 0)),
        compiler_params=pltpu.CompilerParams(
            dimension_semantics=("arbitrary",)),
        cost_estimate=epi_cost,
    )(pooled2d, w1_k, b1_k, w2_k, b2_k)

    return gate.reshape(B, C, 1, 1)


def se_reference(x_nchw, w1, b1, w2, b2):
    """Pure-JAX reference matching the intended PyTorch semantics."""
    B, C, H, W = x_nchw.shape
    Cr = w1.shape[0]
    pooled = jnp.mean(x_nchw.astype(jnp.float32), axis=(2, 3))      # [B, C]
    h = pooled @ w1.reshape(Cr, C).T.astype(jnp.float32) + b1       # [B, Cr]
    h = jnp.maximum(h, 0.0)
    o = h @ w2.reshape(C, Cr).T.astype(jnp.float32) + b2            # [B, C]
    return jax.nn.sigmoid(o).reshape(B, C, 1, 1)


if __name__ == "__main__":
    ratio = 2
    key = jax.random.PRNGKey(0)
    kx, k1, k2, k3, k4, kx2 = jax.random.split(key, 6)

    B, C = 2, 4
    Cr = C // ratio
    w1 = jax.random.normal(k1, (Cr, C, 1, 1), dtype=jnp.float32) * 0.5
    b1 = jax.random.normal(k2, (Cr,), dtype=jnp.float32) * 0.1
    w2 = jax.random.normal(k3, (C, Cr, 1, 1), dtype=jnp.float32) * 0.5
    b2 = jax.random.normal(k4, (C,), dtype=jnp.float32) * 0.1

    # ---- case 1: divisible spatial extent, forced multi-step reduction ----
    x = jax.random.normal(kx, (B, C, 16, 16), dtype=jnp.float32)
    out = jax.block_until_ready(se_forward(x, w1, b1, w2, b2, tile_hw=128))
    ref = se_reference(x, w1, b1, w2, b2)
    assert out.shape == (B, C, 1, 1)
    assert jnp.allclose(out, ref, atol=1e-5, rtol=1e-5), "mismatch vs reference (case 1)"

    # ---- case 2: ragged spatial extent (12x12 = 144), gated tail masking ----
    x2 = jax.random.normal(kx2, (B, C, 12, 12), dtype=jnp.float32)
    out2 = jax.block_until_ready(se_forward(x2, w1, b1, w2, b2, tile_hw=128))
    ref2 = se_reference(x2, w1, b1, w2, b2)
    assert jnp.allclose(out2, ref2, atol=1e-5, rtol=1e-5), "mismatch vs reference (case 2)"

    # ---- case 3: native bf16 input, auto tiling (f32 accumulation in-kernel) ----
    x3 = x.astype(jnp.bfloat16)
    out3 = jax.block_until_ready(se_forward(x3, w1, b1, w2, b2))
    ref3 = se_reference(x3, w1, b1, w2, b2)
    assert jnp.allclose(out3, ref3, atol=1e-4, rtol=1e-4), "mismatch vs reference (case 3)"

    print("KERNEL_OK")
</pallas_src>

<mosaic_0001>
module attributes {stable_mosaic.version = 11 : i64} {
  func.func @_pool_kernel(%arg0: i32, %arg1: i32, %arg2: i32, %arg3: memref<1x4x128xf32, #tpu.memory_space<vmem>>, %arg4: memref<1x1x4xf32, #tpu.memory_space<vmem>>, %arg5: memref<1x4xf32, #tpu.memory_space<vmem>>) attributes {dimension_semantics = [#tpu.dimension_semantics<parallel>, #tpu.dimension_semantics<parallel>, #tpu.dimension_semantics<arbitrary>], iteration_bounds = array<i64: 2, 1, 2>, scalar_prefetch = 0 : i64, scratch_operands = 1 : i64, tpu.core_type = #tpu.core_type<tc>, window_params = [{transform_indices = @transform_0, window_bounds = array<i64: 1, 4, 128>}, {transform_indices = @transform_1, window_bounds = array<i64: 1, 1, 4>}]} {
    %c0_i32 = arith.constant 0 : i32
    %0 = arith.cmpi eq, %arg2, %c0_i32 : i32
    %1 = arith.extui %0 : i1 to i32
    %c0_i32_0 = arith.constant 0 : i32
    %2 = arith.cmpi ne, %1, %c0_i32_0 : i32
    scf.if %2 {
      %cst_8 = arith.constant 0.000000e+00 : f32
      %11 = vector.broadcast %cst_8 : f32 to vector<1x4xf32>
      %c0_9 = arith.constant 0 : index
      %c0_10 = arith.constant 0 : index
      %12 = vector.load %arg5[%c0_9, %c0_10] : memref<1x4xf32, #tpu.memory_space<vmem>>, vector<1x4xf32>
      tpu.vector_store %arg5[%c0_9, %c0_10], %11 {strides = array<i32>} : memref<1x4xf32, #tpu.memory_space<vmem>>, vector<1x4xf32>,
    } else {
    }
    %c0 = arith.constant 0 : index
    %c0_1 = arith.constant 0 : index
    %c0_2 = arith.constant 0 : index
    %3 = vector.load %arg3[%c0, %c0_1, %c0_2] : memref<1x4x128xf32, #tpu.memory_space<vmem>>, vector<1x4x128xf32>
    %c0_3 = arith.constant 0 : index
    %c0_4 = arith.constant 0 : index
    %4 = vector.load %arg5[%c0_3, %c0_4] : memref<1x4xf32, #tpu.memory_space<vmem>>, vector<1x4xf32>
    %cst = arith.constant dense<0.000000e+00> : vector<1x4xf32>
    %5 = vector.multi_reduction <add>, %3, %cst [2] : vector<1x4x128xf32> to vector<1x4xf32>
    %6 = arith.addf %4, %5 : vector<1x4xf32>
    %c0_5 = arith.constant 0 : index
    %c0_6 = arith.constant 0 : index
    %7 = vector.load %arg5[%c0_5, %c0_6] : memref<1x4xf32, #tpu.memory_space<vmem>>, vector<1x4xf32>
    tpu.vector_store %arg5[%c0_5, %c0_6], %6 {strides = array<i32>} : memref<1x4xf32, #tpu.memory_space<vmem>>, vector<1x4xf32>,
    %c1_i32 = arith.constant 1 : i32
    %8 = arith.cmpi eq, %arg2, %c1_i32 : i32
    %9 = arith.extui %8 : i1 to i32
    %c0_i32_7 = arith.constant 0 : i32
    %10 = arith.cmpi ne, %9, %c0_i32_7 : i32
    scf.if %10 {
      %c0_8 = arith.constant 0 : index
      %c0_9 = arith.constant 0 : index
      %11 = vector.load %arg5[%c0_8, %c0_9] : memref<1x4xf32, #tpu.memory_space<vmem>>, vector<1x4xf32>
      %cst_10 = arith.constant 3.906250e-03 : f32
      %12 = vector.broadcast %cst_10 : f32 to vector<1x4xf32>
      %13 = arith.mulf %11, %12 : vector<1x4xf32>
      %14 = vector.shape_cast %13 : vector<1x4xf32> to vector<1x1x4xf32>
      %c0_11 = arith.constant 0 : index
      %c0_12 = arith.constant 0 : index
      %c0_13 = arith.constant 0 : index
      %15 = vector.load %arg4[%c0_11, %c0_12, %c0_13] : memref<1x1x4xf32, #tpu.memory_space<vmem>>, vector<1x1x4xf32>
      tpu.vector_store %arg4[%c0_11, %c0_12, %c0_13], %14 {strides = array<i32>} : memref<1x1x4xf32, #tpu.memory_space<vmem>>, vector<1x1x4xf32>,
    } else {
    }
    return
  }
  func.func @transform_0(%arg0: i32, %arg1: i32, %arg2: i32) -> (i32, i32, i32) {
    %c0_i32 = arith.constant 0 : i32
    return %arg0, %arg1, %arg2 : i32, i32, i32
  }
  func.func @transform_1(%arg0: i32, %arg1: i32, %arg2: i32) -> (i32, i32, i32) {
    %c0_i32 = arith.constant 0 : i32
    %c0_i32_0 = arith.constant 0 : i32
    return %arg0, %c0_i32, %arg1 : i32, i32, i32
  }
}

</mosaic_0001>

<bundles_post_ra>
// kernel: tpu_custom_call.1
= control target key start
LH: loop header
LB: loop body
LE: loop exit
PB: predicated region body
PF: predicated region fallthrough
CT: control target
= control target key end

     0   :  { %6 = vsyncpa [#allocation4], 0  ;;  %s857_s0 = inlined_call_operand.hbm [shape: f32[2,4,256], index: 0, kind: input, shape index: {}]   ;;  %s858_s1 = inlined_call_operand.hbm [shape: f32[2,1,4], index: 1, kind: output, shape index: {}]  }
   0x1   :  { %8 = vsyncpa [#allocation4 + $0x1], 0 }
   0x2   :  { %9 = vsyncpa [#allocation5], 0 }
   0x3   :  { %11 = vsyncpa [#allocation5 + $0x1], 0  ;;  %s635_s6 = smov 0   ;;  %s637_s7 = smov 0  }
   0x4   :  { %s639_s8 = smov 0   ;;  %s641_s9 = smov 0  }
   0x5   :  { %s643_s10 = smov 0   ;;  %s645_s11 = smov 0  }
   0x6   :  { %s647_s12 = smov 0   ;;  %s649_s13 = smov 0  }
   0x7   :  { %s651_s14 = smov 0   ;;  %s653_s15 = smov 0  }
   0x8   :  { %s655_s16 = smov 0  }
   0x9 LB: > { %s346_s17 = sadd.s32 4294967295, %s618_s16   ;;  %s347_s18 = sadd.s32 4294967294, %s618_s16   ;;  %s618_s16 = sphi %s655_s16, %s17_s16   ;;  %s614_s15 = sphi %s653_s15, %s878_s15   ;;  %s610_s14 = sphi %s651_s14, %s877_s14   ;;  %s606_s13 = sphi %s649_s13, %s876_s13   ;;  %s602_s12 = sphi %s647_s12, %s875_s12   ;;  %s598_s11 = sphi %s645_s11, %s874_s11   ;;  %s594_s10 = sphi %s643_s10, %s873_s10   ;;  %s590_s9 = sphi %s641_s9, %s872_s9   ;;  %s586_s8 = sphi %s639_s8, %s871_s8   ;;  %s582_s7 = sphi %s637_s7, %s870_s7   ;;  %s578_s6 = sphi %s635_s6, %s869_s6  }
   0xa   : > { %s29_s19 = sadd.s32 1, %s610_s14  ;;  %s36_s20 = sadd.s32 1, %s614_s15 }
   0xb   : > { %p30_p0 = scmp.ge.s32.totalorder %s29_s19, 2  ;;  %s47_s21 = sadd.s32 1, %s598_s11 }
   0xc   : > { %p54_p1 = scmp.ne.s32.totalorder %s598_s11, %s594_s10  ;;  %p55_p2 = scmp.eq.s32.totalorder %s618_s16, 0 }
   0xd   : > { %s880_s19 = smov (%p30_p0, %s29_s19), 0  ;;  %s882_s20 = smov (!%p30_p0, %s36_s20), %s614_s15 }
   0xe   : > { %s43_s22 = ssub.s32 %s610_s14, %s880_s19  ;;  %p701_p3 = por %p55_p2, %p54_p1 }
   0xf   : > { %p38_p4 = scmp.ge.s32.totalorder %s882_s20, 2  ;;  %p60_p5 = scmp.ne.s32.totalorder %s594_s10, %s590_s9 }
  0x10   : > { %p61_p6 = scmp.eq.s32.totalorder %s346_s17, 0  ;;  %s75_s24 = sadd.s32 1, %s586_s8 }
  0x11   : > { %s884_s20 = smov (%p38_p4, %s882_s20), 0  ;;  %p85_p8 = scmp.ne.s32.totalorder %s586_s8, %s582_s7 }
  0x12   : > { %p709_p7 = por %p61_p6, %p60_p5  ;;  %s40_s26 = ssub.s32 %s614_s15, %s884_s20 }
  0x13   : > { %p86_p9 = scmp.eq.s32.totalorder %s346_s17, 3  ;;  %s44_s27 = sor.u32 %s43_s22, %s40_s26 }
  0x14   : > { %p73_p10 = scmp.eq.s32.totalorder %s40_s26, 0  ;;  %p45_p11 = scmp.eq.s32.totalorder %s44_s27, 0 }
  0x15   : > { %p717_p12 = por %p86_p9, %p85_p8  ;;  %p91_p13 = scmp.ne.s32.totalorder %s582_s7, %s578_s6 }
  0x16   : > { %s722_s29 = scalar_select %p73_p10, %s586_s8, %s75_s24  }
  0x17   : > { %s862_s28 = scalar_select %p717_p12, 1, 0 }
  0x18   : > { %s725_s30 = scalar_select %p45_p11, %s598_s11, %s47_s21  }
  0x19   : > { %p92_p0 = scmp.eq.s32.totalorder %s347_s18, 3  ;;  %p372_p1 = scmp.lt.s32.totalorder %s618_s16, 4 }
  0x1a   : > { %s112_s3 = sand.u32 1, %s598_s11   ;;  %s351_s5 = sshll.u32 %s614_s15, 1 }
  0x1b   : > { %p730_p2 = por %p92_p0, %p91_p13  ;;  %s350_s4 = sshll.u32 %s112_s3, 2 }
  0x1c   : > { %s123_s9 = sadd.s32 %s610_s14, %s351_s5  ;;  %s116_s17 = scalar_lea.vmem [#allocation3], %s350_s4 }
  0x1d   : > { %s863_s2 = scalar_select %p730_p2, 1, 0 }
  0x1e   : > { %s127_s22 = sshll.u32 %s116_s17, 4  ;;  %s352_s26 = sshll.u32 %s123_s9, 6  ;;  %s737_s22 = int_to_ptr.vmem [resolvable:$true] %s127_s22 }
  0x1f   : > { %s742_s27 = scalar_lea.hbm %s857_s0, %s352_s26  ;;  %p746_p4 = pnand %p372_p1, %p701_p3 }
  0x20   : > { %s113_s4 = scalar_lea.sflag [#allocation4], %s112_s3  ;;  %s466_s5 = scalar_lea.hbm %s742_s27, 64 }
  0x21   : > { %p467_p8 = scmp.ne.s32.totalorder %s742_s27, %s466_s5  ;;  %p468_p9 = pneg %p746_p4 }
  0x22   : > { %s471_s17 = scalar_lea.hbm %s857_s0, 256  ;;  %p472_p3 = scmp.lt.u32.totalorder %s742_s27, %s857_s0 }
  0x23   : > { %p469_p10 = pnand %p468_p9, %p467_p8  ;;  %p473_p13 = scmp.lt.u32.totalorder %s471_s17, %s466_s5 }
  0x24   : > { %p475_p1 = scmp.lt.u32.totalorder %s466_s5, %s742_s27 }
  0x25   : > { %p470_p11 = pneg %p469_p10  ;;  %p474_p0 = por %p473_p13, %p472_p3 }
  0x27   : > { %p476_p5 = por %p475_p1, %p474_p0 }
  0x29   : > { %p477_p6 = pnand %p476_p5, %p470_p11 }
  0x2b   : > { %480 = shalt.err (!%p477_p6)
}
  0x2c   : > { %s481_s3 = scalar_lea.vmem %s737_s22, 64  ;;  %s620_s21 = smov [#allocation3]  }
  0x2d   : > { %p482_p8 = scmp.ne.s32.totalorder %s737_s22, %s481_s3  ;;  %s486_s23 = sshll.u32 %s620_s21, 4  ;;  %s487_s23 = int_to_ptr.vmem [resolvable:$false] %s486_s23 }
  0x2e   : > { %s488_s9 = scalar_lea.vmem %s487_s23, 128  ;;  %p489_p12 = scmp.lt.s32.totalorder %s737_s22, %s487_s23 }
  0x2f   : > { %p484_p10 = pnand %p482_p8, %p468_p9  ;;  %p490_p3 = scmp.lt.s32.totalorder %s488_s9, %s481_s3 }
  0x31   : > { %p485_p2 = pneg %p484_p10  ;;  %p491_p13 = por %p490_p3, %p489_p12 }
  0x33   : > { %p492_p0 = pnand %p491_p13, %p485_p2 }
  0x35   : > { %495 = shalt.err (!%p492_p0)
}
  0x36   : > { %367 = dma.hbm_to_vmem [thread:$0]  (!%p746_p4), %s742_s27, 64, %s737_s22, %s113_s4  }
  0x37   : > { %p865_p5 = scmp.lt.s32.totalorder %s618_s16, 5  ;;  %p866_p6 = scmp.ge.s32.totalorder %s618_s16, 1 }
  0x39   : > { %p133_p9 = pnand %p866_p6, %p865_p5 }
  0x3a   : > { %s138_s5 = sand.u32 (!%p133_p9), 1, %s594_s10  }
  0x3b   : > { %136 = sbr.rel (%p133_p9) target bundleno = 402 (0x192), region = 24  ;;  %s354_s17 = sshll.u32 (!%p133_p9), %s138_s5, 2 }
  0x3c   : > { %s139_s26 = scalar_lea.sflag (!%p133_p9), [#allocation4], %s138_s5  ;;  %s142_s24 = scalar_lea.vmem (!%p133_p9), [#allocation3], %s354_s17 }
  0x42   : > { %569 = dma.done.wait (%p709_p7), %s139_s26, 64  }
  0x43   : > { %571 = vsyncadd (%p709_p7), %s139_s26, 4294967232  ;;  %s158_s18 = sand.u32 1, %s582_s7   ;;  %p355_p12 = scmp.ne.s32.totalorder %s602_s12, 0 }
  0x44   : > { %s789_s22 = scalar_lea.vmem [#allocation6], %s158_s18  ;;  %vm164_vm0 = vcmask (!%p355_p12), 24576   ;;  %v621_v0 = vmov (!%p355_p12), 0.0  }
  0x45   : > { %163 = sbr.rel (%p355_p12) target bundleno = 76 (0x4c), region = 32  ;;  %165 = vst.msk [vmem:[#allocation2] sm:$0x1] (!%p355_p12), %vm164_vm0, %v621_v0 }
  0x4c PF: > { %v166_v1 = vld [vmem:[%s142_s24] sm:$0xf]  ;;  %vm168_vm1 = vcmask 1043456   ;;  %v622_v3 = vmov 0   ;;  %v173_v4 = vlaneseq  ;;  %v623_v8 = vmov 1966171168  }
  0x4d   : > { %v169_v2 = vsel %vm168_vm1, %v166_v1, 0.0  ;;  %465 = vset.pattern.permute.xlu0 %v622_v3  ;;  %v192_v9 = vunpack.c.l.s4 %v623_v8  ;;  %v167_v30 = vld [vmem:[#allocation2] sm:$0x1]  ;;  %vm238_vm2 = vcmask 24576   ;;  %p356_p7 = scmp.ne.s32.totalorder %s602_s12, 1 }
  0x4e   : > { %170 = vadd.xlane.f32.xlu0 %v169_v2  ;;  %v174_v5 = vshrl.u32 %v173_v4, 7  ;;  %v217_v6 = vand.u32 127, %v173_v4 }
  0x4f   : > { %v193_v10 = vunpack.c.0.s8 %v192_v9 }
  0x50   : > { %v220_v7 = vsub.s32 %v217_v6, %v174_v5  ;;  %v175_v11 = vsub.s32 0, %v174_v5  ;;  %v179_v12 = vsub.s32 1, %v174_v5  ;;  %v183_v13 = vsub.s32 2, %v174_v5 }
  0x51   : > { %v187_v14 = vsub.s32 3, %v174_v5  ;;  %v196_v16 = vsub.s32 %v193_v10, %v174_v5 }
  0xdb   : > { %v171_v15 = vpop.xlane.xlu0 %170 }
  0xdc   : > { %v176_v17 = vrot.slane %v171_v15, %v175_v11  ;;  %v180_v18 = vrot.slane %v171_v15, %v179_v12  ;;  %v184_v19 = vrot.slane %v171_v15, %v183_v13  ;;  %v188_v20 = vrot.slane %v171_v15, %v187_v14 }
  0xde   : > { %v189_v21 = vcombine.low %v176_v17, %v180_v18  ;;  %v190_v22 = vcombine.low %v184_v19, %v188_v20 }
  0xe0   : > { %v197_v23 = vrot.slane %v189_v21, %v196_v16  ;;  %v204_v24 = vrot.slane %v190_v22, %v196_v16 }
  0xe2   : > { %v205_v25 = vcombine.low %v197_v23, %v204_v24 }
  0xe4   : > { %v212_v26 = vrot.slane %v205_v25, %v196_v16 }
  0xe6   : > { %214 = vperm.xlu0 %465, %v212_v26  }
 0x165   : > { %v215_v27 = vpop.permute.xlu0 %214 }
 0x166   : > { %v221_v28 = vrot.slane %v215_v27, %v220_v7 }
 0x168   : > { %v228_v29 = vrot.slane %v221_v28, %v196_v16  ;;  %243 = sbr.rel (%p356_p7) target bundleno = 377 (0x179), region = 36 }
 0x16a   : > { %v235_v31 = vrot.slane %v228_v29, %v196_v16 }
 0x16c   : > { %v237_v32 = vadd.f32 %v235_v31, %v167_v30 }
 0x16e   : > { %239 = vst.msk [vmem:[#allocation2] sm:$0x1] %vm238_vm2, %v237_v32 }
 0x175   : > { %v244_v33 = vld [vmem:[#allocation2] sm:$0x1] }
 0x176   : > { %v245_v34 = vmul.f32 0.00390625, %v244_v33 }
 0x178   : > { %246 = vst.msk [vmem:[%s789_s22] sm:$0x1] %vm238_vm2, %v245_v34 }
 0x179 PF: > { %s357_s25 = sshll.u32 %s606_s13, 4  ;;  %s261_s21 = sshll.u32 %s789_s22, 4  ;;  %s262_s21 = int_to_ptr.vmem [resolvable:$true] %s261_s21 }
 0x17a   : > { %s798_s3 = scalar_lea.hbm %s858_s1, %s357_s25  ;;  %s248_s12 = scalar_lea.sflag [#allocation5], %s158_s18 }
 0x17b   : > { %s496_s23 = scalar_lea.vmem %s262_s21, 16  ;;  %p867_p4 = scmp.ne.s32.totalorder %s862_s28, 0 }
 0x17c   : > { %p497_p2 = scmp.ne.s32.totalorder %s262_s21, %s496_s23  ;;  %s624_s9 = smov [#allocation6]  }
 0x17d   : > { %s500_s5 = sshll.u32 %s624_s9, 4  ;;  %s501_s5 = int_to_ptr.vmem [resolvable:$false] %s500_s5 }
 0x17e   : > { %p498_p11 = pnand %p497_p2, %p867_p4  ;;  %s502_s17 = scalar_lea.vmem %s501_s5, 32 }
 0x17f   : > { %p503_p8 = scmp.lt.s32.totalorder %s262_s21, %s501_s5  ;;  %p504_p10 = scmp.lt.s32.totalorder %s502_s17, %s496_s23 }
 0x180   : > { %p499_p1 = pneg %p498_p11 }
 0x181   : > { %p505_p3 = por %p504_p10, %p503_p8 }
 0x183   : > { %p506_p13 = pnand %p505_p3, %p499_p1 }
 0x185   : > { %509 = shalt.err (!%p506_p13)
}
 0x186   : > { %s510_s13 = scalar_lea.hbm %s798_s3, 16  ;;  %s514_s18 = scalar_lea.hbm %s858_s1, 32 }
 0x187   : > { %p511_p0 = scmp.ne.s32.totalorder %s798_s3, %s510_s13  ;;  %p515_p9 = scmp.lt.u32.totalorder %s798_s3, %s858_s1 }
 0x188   : > { %p516_p12 = scmp.lt.u32.totalorder %s514_s18, %s510_s13  ;;  %p518_p2 = scmp.lt.u32.totalorder %s510_s13, %s798_s3 }
 0x189   : > { %p512_p5 = pnand %p511_p0, %p867_p4 }
 0x18a   : > { %p517_p7 = por %p516_p12, %p515_p9 }
 0x18b   : > { %p513_p6 = pneg %p512_p5 }
 0x18c   : > { %p519_p11 = por %p518_p2, %p517_p7 }
 0x18e   : > { %p520_p1 = pnand %p519_p11, %p513_p6 }
 0x190   : > { %523 = shalt.err (!%p520_p1)
}
 0x191   : > { %362 = dma.vmem_to_hbm [thread:$0]  (%p867_p4), %s262_s21, 16, %s798_s3, %s248_s12  }
 0x192 PF: > { %p373_p8 = scmp.ge.s32.totalorder %s618_s16, 2  ;;  %s273_s27 = sand.u32 1, %s578_s6  }
 0x193   : > { %p868_p10 = scmp.ne.s32.totalorder %s863_s2, 0  ;;  %s274_s4 = scalar_lea.sflag [#allocation5], %s273_s27 }
 0x195   : > { %p369_p3 = pnand %p373_p8, %p868_p10 }
 0x197   : > { %573 = dma.done.wait (!%p369_p3), %s274_s4, 16  }
 0x198   : > { %575 = vsyncadd (!%p369_p3), %s274_s4, 4294967280  ;;  %s17_s16 = sadd.s32 1, %s618_s16   ;;  %s869_s6 = smov %s582_s7 }
 0x199   : > { %p14_p13 = scmp.ge.s32.totalorder %s17_s16, 6   ;;  %s870_s7 = smov %s586_s8 }
 0x19a   : > { %s871_s8 = smov %s722_s29  ;;  %s872_s9 = smov %s594_s10 }
 0x19b   : > { %s873_s10 = smov %s598_s11  ;;  %s874_s11 = smov %s725_s30 }
 0x19c   : > { %s875_s12 = smov %s610_s14  ;;  %s876_s13 = smov %s614_s15 }
 0x19d   : > { %s877_s14 = smov %s880_s19  ;;  %s878_s15 = smov %s884_s20 }
 0x19e   :  { %16 = sbr.rel (!%p14_p13) target bundleno = 9 (0x9), region = 77 }
 0x1a5   :  { %278 = vsyncpa [#allocation4], 1 }
 0x1a6   :  { %280 = vsyncpa [#allocation4 + $0x1], 1 }
 0x1a7   :  { %281 = vsyncpa [#allocation5], 1 }
 0x1a8   :  { %283 = vsyncpa [#allocation5 + $0x1], 1 }

</bundles_post_ra>
